<compile_context>
chip_gen: v6e
topology: v6e:2x2x1
jax: 0.10.0
libtpu: 0.0.40
codegen_flags: <defaults>
</compile_context>

<pallas_src>
import functools

import jax
import jax.numpy as jnp
from jax.experimental import pallas as pl
from jax.experimental.pallas import tpu as pltpu


def linear_clamp_kernel(x_ref, w_ref, b_ref, o_ref, *, min_value, max_value):
    # v1 = x @ W^T + b   (weight already stored transposed as (K, N))
    y = jnp.dot(x_ref[...], w_ref[...], preferred_element_type=jnp.float32)
    y = y + b_ref[...]                       # (B, N) + (1, N) broadcast
    # v2 = clamp_min(v1, min_value); v3 = clamp_max(v2, max_value)
    y = jnp.maximum(y, min_value)            # compile-time constants: no SMEM
    y = jnp.minimum(y, max_value)            # loads on the critical path
    o_ref[...] = y.astype(o_ref.dtype)


def make_model_forward(min_value, max_value):
    """Build a jitted forward with the clamp bounds closed over statically."""
    kernel = functools.partial(
        linear_clamp_kernel,
        min_value=float(min_value),
        max_value=float(max_value),
    )

    @jax.jit
    def model_forward(x, w_t, b):
        """x: (B, K) f32, w_t: (K, N) f32 (pre-transposed weight), b: (1, N) f32."""
        B, _ = x.shape
        N = w_t.shape[1]
        # Problem is ~3 KiB total: gridless single-tile kernel. The (8, 32)
        # output deliberately stays narrow (no lane padding to 128) — padding
        # would only add HBM writeback here.
        # TODO(synk): if B ever grows >=256, add a grid over B with
        # dimension_semantics=("parallel",) so v7x's second TensorCore is used,
        # keeping w_t/b BlockSpecs pinned to block (0, 0).
        return pl.pallas_call(
            kernel,
            out_shape=jax.ShapeDtypeStruct((B, N), x.dtype),
            in_specs=[
                pl.BlockSpec(memory_space=pltpu.MemorySpace.VMEM),   # x
                pl.BlockSpec(memory_space=pltpu.MemorySpace.VMEM),   # w_t
                pl.BlockSpec(memory_space=pltpu.MemorySpace.VMEM),   # bias
            ],
            out_specs=pl.BlockSpec(memory_space=pltpu.MemorySpace.VMEM),
        )(x, w_t, b)

    return model_forward


if __name__ == "__main__":
    key = jax.random.PRNGKey(0)
    k_x, k_w, k_b = jax.random.split(key, 3)

    B, K, N = 8, 16, 32                      # nn.Linear(16, 32)
    min_value = 0.0
    max_value = 1.0

    x = jax.random.normal(k_x, (B, K), dtype=jnp.float32)
    # Deterministic "Linear" params: PyTorch-style weight (N, K), but stored
    # pre-transposed as (K, N) so no transpose happens at call time.
    w = jax.random.normal(k_w, (N, K), dtype=jnp.float32) * (1.0 / jnp.sqrt(K))
    b = jax.random.normal(k_b, (N,), dtype=jnp.float32) * 0.1

    w_t = jnp.asarray(w.T)                   # (K, N), materialized once
    b_row = b.reshape(1, N)

    model_forward = make_model_forward(min_value, max_value)

    out = model_forward(x, w_t, b_row)
    out = jax.block_until_ready(out)

    # Reference check in plain JAX.
    ref = jnp.clip(x @ w.T + b, min_value, max_value)
    assert out.shape == (B, N)
    assert jnp.allclose(out, ref, atol=1e-5, rtol=1e-5)
    print("KERNEL_OK")
</pallas_src>

<mosaic_0001>
module attributes {stable_mosaic.version = 11 : i64} {
  func.func @linear_clamp_kernel(%arg0: memref<8x16xf32, #tpu.memory_space<vmem>>, %arg1: memref<16x32xf32, #tpu.memory_space<vmem>>, %arg2: memref<1x32xf32, #tpu.memory_space<vmem>>, %arg3: memref<8x32xf32, #tpu.memory_space<vmem>>) attributes {dimension_semantics = [], scalar_prefetch = 0 : i64, scratch_operands = 0 : i64, tpu.core_type = #tpu.core_type<tc>} {
    %c0 = arith.constant 0 : index
    %c0_0 = arith.constant 0 : index
    %0 = vector.load %arg0[%c0, %c0_0] : memref<8x16xf32, #tpu.memory_space<vmem>>, vector<8x16xf32>
    %c0_1 = arith.constant 0 : index
    %c0_2 = arith.constant 0 : index
    %1 = vector.load %arg1[%c0_1, %c0_2] : memref<16x32xf32, #tpu.memory_space<vmem>>, vector<16x32xf32>
    %cst = arith.constant dense<0.000000e+00> : vector<8x32xf32>
    %2 = tpu.matmul %0, %1, %cst {dimension_numbers = #tpu.dot_dimension_numbers<[1], [0], [0], [1], [0, 0, 1, 1], [], []>} : vector<8x16xf32>, vector<16x32xf32>, vector<8x32xf32> -> vector<8x32xf32>
    %c0_3 = arith.constant 0 : index
    %c0_4 = arith.constant 0 : index
    %3 = vector.load %arg2[%c0_3, %c0_4] : memref<1x32xf32, #tpu.memory_space<vmem>>, vector<1x32xf32>
    %4 = vector.broadcast %3 : vector<1x32xf32> to vector<8x32xf32>
    %5 = arith.addf %2, %4 : vector<8x32xf32>
    %cst_5 = arith.constant 0.000000e+00 : f32
    %6 = vector.broadcast %cst_5 : f32 to vector<8x32xf32>
    %7 = arith.maximumf %5, %6 : vector<8x32xf32>
    %cst_6 = arith.constant 1.000000e+00 : f32
    %8 = vector.broadcast %cst_6 : f32 to vector<8x32xf32>
    %9 = arith.minimumf %7, %8 : vector<8x32xf32>
    %c0_7 = arith.constant 0 : index
    %c0_8 = arith.constant 0 : index
    %10 = vector.load %arg3[%c0_7, %c0_8] : memref<8x32xf32, #tpu.memory_space<vmem>>, vector<8x32xf32>
    tpu.vector_store %arg3[%c0_7, %c0_8], %9 {strides = array<i32>} : memref<8x32xf32, #tpu.memory_space<vmem>>, vector<8x32xf32>,
    return
  }
}

</mosaic_0001>

<bundles_post_ra>
// kernel: model_forward.1
= control target key start
LH: loop header
LB: loop body
LE: loop exit
PB: predicated region body
PF: predicated region fallthrough
CT: control target
= control target key end

     0   :  { %8 = vsyncpa [#allocation3], 0  ;;  %s269_s0 = inlined_call_operand.hbm [shape: f32[8,16], index: 0, kind: input, shape index: {}]   ;;  %s270_s1 = inlined_call_operand.hbm [shape: f32[16,32], index: 1, kind: input, shape index: {}]   ;;  %s271_s2 = inlined_call_operand.vmem [shape: f32[1,32], index: 2, kind: input, shape index: {}]   ;;  %s272_s3 = inlined_call_operand.hbm [shape: f32[8,32], index: 3, kind: output, shape index: {}]  }
   0x1   :  { %9 = vsyncpa [#allocation6], 0 }
   0x2   :  { %10 = vsyncpa [#allocation4], 0  ;;  %s230_s12 = smov [#allocation2]   ;;  %s231_s14 = smov [#allocation5]  }
   0x3   :  { %s17_s13 = sshll.u32 %s230_s12, 4  ;;  %s26_s15 = sshll.u32 %s231_s14, 4  ;;  %s18_s13 = int_to_ptr.vmem [resolvable:$true] %s17_s13  ;;  %s27_s15 = int_to_ptr.vmem [resolvable:$true] %s26_s15 }
   0x4   :  { %s172_s16 = scalar_lea.vmem %s18_s13, 128  ;;  %p177_p1 = scmp.lt.s32.totalorder %s18_s13, %s18_s13 }
   0x5   :  { %p173_p0 = scmp.ne.s32.totalorder %s18_s13, %s172_s16  ;;  %p178_p2 = scmp.lt.s32.totalorder %s172_s16, %s172_s16 }
   0x7   :  { %p179_p3 = por %p178_p2, %p177_p1 }
   0x9   :  { %p180_p4 = pnand %p179_p3, %p173_p0 }
   0xb   :  { %183 = shalt.err (!%p180_p4)
}
   0xc   :  { %20 = dma.hbm_to_vmem [thread:$0]  %s269_s0, 128, %s18_s13, [#allocation3]  }
   0xd   :  { %s192_s19 = scalar_lea.vmem %s27_s15, 256  ;;  %p197_p6 = scmp.lt.s32.totalorder %s27_s15, %s27_s15 }
   0xe   :  { %p193_p5 = scmp.ne.s32.totalorder %s27_s15, %s192_s19  ;;  %p198_p7 = scmp.lt.s32.totalorder %s192_s19, %s192_s19 }
  0x10   :  { %p199_p8 = por %p198_p7, %p197_p6 }
  0x12   :  { %p200_p9 = pnand %p199_p8, %p193_p5 }
  0x14   :  { %203 = shalt.err (!%p200_p9)
}
  0x15   :  { %s232_s20 = smov 128   ;;  %s233_s21 = smov 8  }
  0x16   :  { %32 = dma.hbm_to_vmem [thread:$0]  %s270_s1, 256, %s27_s15, [#allocation6], %s232_s20, %s232_s20, %s233_s21  }
  0x17   :  { %224 = dma.done.wait [#allocation3], 128  }
  0x18   :  { %225 = vsyncadd [#allocation3], 4294967168 }
  0x19   :  { %226 = dma.done.wait [#allocation6], 256  }
  0x1a   :  { %227 = vsyncadd [#allocation6], 4294967040  ;;  %v234_v0 = vmov 0.0   ;;  %vm235_vm0 = vmmov 0   ;;  %v43_v1 = vld [vmem:[#allocation5 + $0x8] sm:$0xff]  ;;  %v42_v2 = vld [vmem:[#allocation5] sm:$0xff] }
  0x1b   :  { %150 = vmatprep.subr.mxu0 %v234_v0  ;;  %154 = vmatprep.mubr.msk.f32.mxu0 %vm235_vm0, %v234_v0  ;;  %v41_v3 = vld [vmem:[#allocation2] sm:$0xff]  ;;  %vm51_vm1 = vcmask 130048   ;;  %s236_s1 = smov [#allocation7]   ;;  %vm127_vm2 = vcmask 261120  }
  0x1c   :  { %151 = vmatpush3.msra.mxu0 %v43_v1  ;;  %v145_v4 = vld [vmem:[%s271_s2] ss:$0 sm:$0xff]  ;;  %s135_s25 = sshll.u32 %s236_s1, 4  ;;  %s136_s25 = int_to_ptr.vmem [resolvable:$true] %s135_s25 }
  0x1d   :  { %152 = vmatprep.subr.mxu0 %v234_v0  ;;  %s204_s26 = scalar_lea.vmem %s136_s25, 128  ;;  %p209_p11 = scmp.lt.s32.totalorder %s136_s25, %s136_s25 }
  0x1e   :  { %153 = vmatpush3.msra.mxu0 %v42_v2  ;;  %p205_p10 = scmp.ne.s32.totalorder %s136_s25, %s204_s26  ;;  %p210_p12 = scmp.lt.s32.totalorder %s204_s26, %s204_s26 }
  0x1f   :  { %155 = vmatmul.mubr.msk.f32.vlgmr.msra.gmra.mxu0 %vm51_vm1, %v41_v3 }
  0x20   :  { %p211_p13 = por %p210_p12, %p209_p11 }
  0x22   :  { %p212_p0 = pnand %p211_p13, %p205_p10 }
  0xdf   :  { %v121_v5 = vpop.f32.mrf.mxu0 }
  0xe0   :  { %v122_v6 = vadd.f32 %v145_v4, %v121_v5 }
  0xe1   :  { %v156_v7 = vpop.f32.mrf.mxu0 }
  0xe2   :  { %v125_v8 = vmax.f32 %v122_v6, 0.0 }
  0xe4   :  { %v126_v9 = vmin.f32 %v125_v8, 1.0 }
  0xe6   :  { %128 = vst.msk [vmem:[#allocation7] sm:$0xff] %vm127_vm2, %v126_v9 }
  0xe7   :  { %215 = shalt.err (!%p212_p0)
}
  0xe8   :  { %138 = dma.vmem_to_hbm [thread:$0]  %s136_s25, 128, %s272_s3, [#allocation4]  }
  0xe9   :  { %228 = dma.done.wait [#allocation4], 128  }
  0xea   :  { %229 = vsyncadd [#allocation4], 4294967168 }
  0xeb   :  { %142 = vsyncpa [#allocation3], 1 }
  0xec   :  { %143 = vsyncpa [#allocation6], 1 }
  0xed   :  { %144 = vsyncpa [#allocation4], 1 }

</bundles_post_ra>
